<compile_context>
chip_gen: v7x
topology: tpu7x:2x2x1
jax: 0.10.0
libtpu: 0.0.40
codegen_flags: <defaults>
</compile_context>

<pallas_src>
import jax
import jax.numpy as jnp
from jax import lax
from jax.experimental import pallas as pl
from jax.experimental.pallas import tpu as pltpu

IN_FEATURES = 102
HIDDEN = 50
OUT_FEATURES = 1


def _round_up(n, m):
    return ((n + m - 1) // m) * m


def _mlp_kernel(x_ref, w1_ref, b1_ref, w2_ref, b2_ref, o_ref):
    # x:  (tb, 102) f32   w1: (102, 50) f32   b1: (1, 50) f32
    # w2: (1, 50)   f32   b2: (1, 1)    f32   o:  (1, tb) f32  (lane-dense)
    # fc1 on the MXU with f32 accumulation (Mosaic pads K=102 / N=50 in VMEM).
    h = jnp.dot(x_ref[...], w1_ref[...], preferred_element_type=jnp.float32)
    h = jnp.maximum(h + b1_ref[...], 0.0)                      # bias + ReLU (VPU)
    # fc2: contract both operands' HIDDEN dims -> result is already the
    # lane-dense (1, tb) row; no (tb, 1) column and no masked partial stores.
    z = lax.dot_general(
        w2_ref[...], h,
        dimension_numbers=(((1,), (1,)), ((), ())),
        preferred_element_type=jnp.float32,
    )
    z = z + b2_ref[...]
    # sigmoid(z) = 0.5 * tanh(0.5 * z) + 0.5  -> single EUP push per dense vreg.
    o_ref[...] = 0.5 * jnp.tanh(0.5 * z) + 0.5


def _choose_tile(batch, block_batch):
    # Lane-dense output block (1, tb) requires tb % 128 == 0.
    tb = max(128, min(_round_up(block_batch, 128), _round_up(batch, 128)))
    # For big batches prefer >= 2 tiles so both v7x TensorCores get work,
    # as long as each tile stays large enough that DMA >> per-step overhead.
    while pl.cdiv(batch, tb) < 2 and tb >= 2048:
        tb = _round_up(tb // 2, 128)
    return tb


def net_forward(x, w1, b1, w2, b2, *, block_batch=4096):
    """x: (B, 102) f32 -> (B, 1) f32.

    w1: (102, 50), b1: (50,), w2: (50, 1), b2: (1,)
    (weights stored transposed relative to PyTorch so the kernel does x @ w).
    """
    B = x.shape[0]
    assert x.shape == (B, IN_FEATURES)
    x = x.astype(jnp.float32)

    tb = _choose_tile(B, block_batch)
    num_tiles = pl.cdiv(B, tb)   # ragged last block: Pallas pads the read;
    n_out = num_tiles * tb       # garbage columns are sliced off below.

    w1_f = w1.astype(jnp.float32)                          # (102, 50) resident
    b1_2d = b1.reshape(1, HIDDEN).astype(jnp.float32)      # (1, 50)
    w2_row = w2.reshape(1, HIDDEN).astype(jnp.float32)     # (50, 1) -> (1, 50)
    b2_2d = b2.reshape(1, 1).astype(jnp.float32)           # (1, 1)

    cost = pl.CostEstimate(
        flops=n_out * (2 * IN_FEATURES * HIDDEN + 2 * HIDDEN + HIDDEN + 4),
        transcendentals=n_out,
        bytes_accessed=(B * IN_FEATURES * 4
                        + (w1_f.size + b1_2d.size + w2_row.size + b2_2d.size) * 4
                        + n_out * 4),
    )

    out = pl.pallas_call(
        _mlp_kernel,
        out_shape=jax.ShapeDtypeStruct((1, n_out), jnp.float32),
        grid=(num_tiles,),
        in_specs=[
            # x: tiled over batch, full 102-wide rows read straight from HBM
            # (no wrapper-side pad / dtype-conversion pass over the batch).
            pl.BlockSpec((tb, IN_FEATURES), lambda i: (i, 0)),
            pl.BlockSpec((IN_FEATURES, HIDDEN), lambda i: (0, 0)),  # w1 resident
            pl.BlockSpec((1, HIDDEN), lambda i: (0, 0)),            # b1 resident
            pl.BlockSpec((1, HIDDEN), lambda i: (0, 0)),            # w2 resident
            pl.BlockSpec((1, 1), lambda i: (0, 0)),                 # b2 resident
        ],
        # Lane-dense output: last block dim (tb, multiple of 128) -> unmasked vst.
        out_specs=pl.BlockSpec((1, tb), lambda i: (0, i)),
        compiler_params=pltpu.CompilerParams(
            dimension_semantics=("parallel",),  # batch tiles shard across TCs on v7x
        ),
        cost_estimate=cost,
    )(x, w1_f, b1_2d, w2_row, b2_2d)

    # Slice exactly the first B logical rows back out of the lane-dense row.
    return out[0, :B].reshape(B, OUT_FEATURES)


def init_params(key):
    """Deterministic PyTorch-style uniform(-1/sqrt(fan_in), 1/sqrt(fan_in)) init."""
    k1, k2, k3, k4 = jax.random.split(key, 4)
    bound1 = 1.0 / jnp.sqrt(jnp.float32(IN_FEATURES))
    bound2 = 1.0 / jnp.sqrt(jnp.float32(HIDDEN))
    w1 = jax.random.uniform(k1, (IN_FEATURES, HIDDEN), jnp.float32, -bound1, bound1)
    b1 = jax.random.uniform(k2, (HIDDEN,), jnp.float32, -bound1, bound1)
    w2 = jax.random.uniform(k3, (HIDDEN, OUT_FEATURES), jnp.float32, -bound2, bound2)
    b2 = jax.random.uniform(k4, (OUT_FEATURES,), jnp.float32, -bound2, bound2)
    return w1, b1, w2, b2


def _reference(x, w1, b1, w2, b2):
    h = jnp.maximum(jnp.dot(x, w1, precision="highest") + b1, 0.0)
    return jax.nn.sigmoid(jnp.dot(h, w2, precision="highest") + b2)


if __name__ == "__main__":
    key = jax.random.PRNGKey(0)
    k_x, k_p = jax.random.split(key)
    w1, b1, w2, b2 = init_params(k_p)

    # Small batch (single tile, block bigger than the array).
    x = jax.random.normal(k_x, (8, IN_FEATURES), jnp.float32)
    out = jax.block_until_ready(net_forward(x, w1, b1, w2, b2))
    ref = _reference(x, w1, b1, w2, b2)
    assert out.shape == (8, OUT_FEATURES)
    assert jnp.allclose(out, ref, atol=5e-3, rtol=0), float(jnp.max(jnp.abs(out - ref)))

    # Ragged, multi-tile path: B=300 with 128-row tiles -> 3 grid steps,
    # last block padded, output sliced back to 300 rows.
    x2 = jax.random.normal(jax.random.PRNGKey(1), (300, IN_FEATURES), jnp.float32)
    out2 = jax.block_until_ready(net_forward(x2, w1, b1, w2, b2, block_batch=128))
    ref2 = _reference(x2, w1, b1, w2, b2)
    assert out2.shape == (300, OUT_FEATURES)
    assert jnp.allclose(out2, ref2, atol=5e-3, rtol=0), float(jnp.max(jnp.abs(out2 - ref2)))

    # Non-tile-aligned small batch with default tiling.
    x3 = jax.random.normal(jax.random.PRNGKey(2), (37, IN_FEATURES), jnp.float32)
    out3 = jax.block_until_ready(net_forward(x3, w1, b1, w2, b2))
    ref3 = _reference(x3, w1, b1, w2, b2)
    assert out3.shape == (37, OUT_FEATURES)
    assert jnp.allclose(out3, ref3, atol=5e-3, rtol=0), float(jnp.max(jnp.abs(out3 - ref3)))

    print("KERNEL_OK")
</pallas_src>

<mosaic_0001>
module attributes {stable_mosaic.version = 11 : i64} {
  func.func @_mlp_kernel(%arg0: i32, %arg1: memref<128x102xf32, #tpu.memory_space<vmem>>, %arg2: memref<102x50xf32, #tpu.memory_space<vmem>>, %arg3: memref<1x50xf32, #tpu.memory_space<vmem>>, %arg4: memref<1x50xf32, #tpu.memory_space<vmem>>, %arg5: memref<1x1xf32, #tpu.memory_space<vmem>>, %arg6: memref<1x128xf32, #tpu.memory_space<vmem>>) attributes {dimension_semantics = [#tpu.dimension_semantics<parallel>], iteration_bounds = array<i64: 1>, scalar_prefetch = 0 : i64, scratch_operands = 0 : i64, tpu.core_type = #tpu.core_type<tc>, window_params = [{transform_indices = @transform_0, window_bounds = array<i64: 128, 102>}, {pipeline_mode = #tpu.pipeline_mode<synchronous>, transform_indices = @transform_1, window_bounds = array<i64: 102, 50>}, {pipeline_mode = #tpu.pipeline_mode<synchronous>, transform_indices = @transform_2, window_bounds = array<i64: 1, 50>}, {pipeline_mode = #tpu.pipeline_mode<synchronous>, transform_indices = @transform_3, window_bounds = array<i64: 1, 50>}, {pipeline_mode = #tpu.pipeline_mode<synchronous>, transform_indices = @transform_4, window_bounds = array<i64: 1, 1>}, {transform_indices = @transform_5, window_bounds = array<i64: 1, 128>}]} {
    %c0 = arith.constant 0 : index
    %c0_0 = arith.constant 0 : index
    %0 = vector.load %arg1[%c0, %c0_0] : memref<128x102xf32, #tpu.memory_space<vmem>>, vector<128x102xf32>
    %c0_1 = arith.constant 0 : index
    %c0_2 = arith.constant 0 : index
    %1 = vector.load %arg2[%c0_1, %c0_2] : memref<102x50xf32, #tpu.memory_space<vmem>>, vector<102x50xf32>
    %cst = arith.constant dense<0.000000e+00> : vector<128x50xf32>
    %2 = tpu.matmul %0, %1, %cst {dimension_numbers = #tpu.dot_dimension_numbers<[1], [0], [0], [1], [0, 0, 1, 1], [], []>} : vector<128x102xf32>, vector<102x50xf32>, vector<128x50xf32> -> vector<128x50xf32>
    %c0_3 = arith.constant 0 : index
    %c0_4 = arith.constant 0 : index
    %3 = vector.load %arg3[%c0_3, %c0_4] : memref<1x50xf32, #tpu.memory_space<vmem>>, vector<1x50xf32>
    %4 = vector.broadcast %3 : vector<1x50xf32> to vector<128x50xf32>
    %5 = arith.addf %2, %4 : vector<128x50xf32>
    %cst_5 = arith.constant 0.000000e+00 : f32
    %6 = vector.broadcast %cst_5 : f32 to vector<128x50xf32>
    %7 = arith.maximumf %5, %6 : vector<128x50xf32>
    %c0_6 = arith.constant 0 : index
    %c0_7 = arith.constant 0 : index
    %8 = vector.load %arg4[%c0_6, %c0_7] : memref<1x50xf32, #tpu.memory_space<vmem>>, vector<1x50xf32>
    %cst_8 = arith.constant dense<0.000000e+00> : vector<1x128xf32>
    %9 = tpu.matmul %8, %7, %cst_8 {dimension_numbers = #tpu.dot_dimension_numbers<[1], [1], [0], [0], [0, 0, 1, 0], [], []>} : vector<1x50xf32>, vector<128x50xf32>, vector<1x128xf32> -> vector<1x128xf32>
    %c0_9 = arith.constant 0 : index
    %c0_10 = arith.constant 0 : index
    %10 = vector.load %arg5[%c0_9, %c0_10] : memref<1x1xf32, #tpu.memory_space<vmem>>, vector<1x1xf32>
    %11 = vector.broadcast %10 : vector<1x1xf32> to vector<1x128xf32>
    %12 = arith.addf %9, %11 : vector<1x128xf32>
    %cst_11 = arith.constant 5.000000e-01 : f32
    %13 = vector.broadcast %cst_11 : f32 to vector<1x128xf32>
    %14 = arith.mulf %13, %12 : vector<1x128xf32>
    %15 = math.tanh %14 : vector<1x128xf32>
    %cst_12 = arith.constant 5.000000e-01 : f32
    %16 = vector.broadcast %cst_12 : f32 to vector<1x128xf32>
    %17 = arith.mulf %16, %15 : vector<1x128xf32>
    %cst_13 = arith.constant 5.000000e-01 : f32
    %18 = vector.broadcast %cst_13 : f32 to vector<1x128xf32>
    %19 = arith.addf %17, %18 : vector<1x128xf32>
    %c0_14 = arith.constant 0 : index
    %c0_15 = arith.constant 0 : index
    %20 = vector.load %arg6[%c0_14, %c0_15] : memref<1x128xf32, #tpu.memory_space<vmem>>, vector<1x128xf32>
    tpu.vector_store %arg6[%c0_14, %c0_15], %19 {strides = array<i32>} : memref<1x128xf32, #tpu.memory_space<vmem>>, vector<1x128xf32>,
    return
  }
  func.func @transform_0(%arg0: i32) -> (i32, i32) {
    %c0_i32 = arith.constant 0 : i32
    %c0_i32_0 = arith.constant 0 : i32
    return %arg0, %c0_i32 : i32, i32
  }
  func.func @transform_1(%arg0: i32) -> (i32, i32) {
    %c0_i32 = arith.constant 0 : i32
    %c0_i32_0 = arith.constant 0 : i32
    %c0_i32_1 = arith.constant 0 : i32
    return %c0_i32, %c0_i32_0 : i32, i32
  }
  func.func @transform_2(%arg0: i32) -> (i32, i32) {
    %c0_i32 = arith.constant 0 : i32
    %c0_i32_0 = arith.constant 0 : i32
    %c0_i32_1 = arith.constant 0 : i32
    return %c0_i32, %c0_i32_0 : i32, i32
  }
  func.func @transform_3(%arg0: i32) -> (i32, i32) {
    %c0_i32 = arith.constant 0 : i32
    %c0_i32_0 = arith.constant 0 : i32
    %c0_i32_1 = arith.constant 0 : i32
    return %c0_i32, %c0_i32_0 : i32, i32
  }
  func.func @transform_4(%arg0: i32) -> (i32, i32) {
    %c0_i32 = arith.constant 0 : i32
    %c0_i32_0 = arith.constant 0 : i32
    %c0_i32_1 = arith.constant 0 : i32
    return %c0_i32, %c0_i32_0 : i32, i32
  }
  func.func @transform_5(%arg0: i32) -> (i32, i32) {
    %c0_i32 = arith.constant 0 : i32
    %c0_i32_0 = arith.constant 0 : i32
    return %c0_i32, %arg0 : i32, i32
  }
}

</mosaic_0001>

<bundles_post_ra>
// kernel: tpu_custom_call.1
= control target key start
LH: loop header
LB: loop body
LE: loop exit
PB: predicated region body
PF: predicated region fallthrough
CT: control target
= control target key end

     0   :  { %s869_s0 = inlined_call_operand.vmem [shape: f32[8,102], index: 0, kind: input, shape index: {}]   ;;  %s870_s1 = inlined_call_operand.vmem [shape: f32[102,50], index: 1, kind: input, shape index: {}]   ;;  %s871_s2 = inlined_call_operand.vmem [shape: f32[1,50], index: 2, kind: input, shape index: {}]   ;;  %s872_s3 = inlined_call_operand.vmem [shape: f32[1,50], index: 3, kind: input, shape index: {}]   ;;  %s873_s4 = inlined_call_operand.<no memory space> [shape: f32[1,1], index: 4, kind: input, shape index: {}]   ;;  %s874_s5 = inlined_call_operand.hbm [shape: f32[1,128], index: 5, kind: output, shape index: {}]  }
   0x1   :  { %v10_v0 = vstv %s873_s4 }
   0x2   :  { %11 = vst [vmem:[#allocation2] sm:$0x1] %v10_v0 }
   0x3   :  { %v39_v1 = vld [vmem:[%s870_s1] sm:$0xff]  ;;  %v40_v2 = vld [vmem:[%s870_s1 + $0x8] sm:$0xff]  ;;  %v41_v3 = vld [vmem:[%s870_s1 + $0x10] sm:$0xff]  ;;  %vm59_vm0 = vcmask 834560  }
   0x4   :  { %v591_v4 = vpack.c.bf16 %v40_v2, %v39_v1  ;;  %v42_v5 = vld [vmem:[%s870_s1 + $0x18] sm:$0xff]  ;;  %v43_v7 = vld [vmem:[%s870_s1 + $0x20] sm:$0xff]  ;;  %v44_v8 = vld [vmem:[%s870_s1 + $0x28] sm:$0xff] }
   0x5   :  { %v595_v6 = vpack.c.bf16 %v42_v5, %v41_v3  ;;  %v23_v9 = vld [vmem:[%s869_s0] sm:$0xff]  ;;  %v599_v10 = vpack.c.bf16 %v44_v8, %v43_v7  ;;  %v45_v11 = vld [vmem:[%s870_s1 + $0x30] sm:$0xff]  ;;  %v46_v12 = vld [vmem:[%s870_s1 + $0x38] sm:$0xff] }
   0x6   :  { %592 = vmatprep.subr.bf16.mxu0 %v591_v4  ;;  %532 = vmatprep.mubr.msk.f32.mxu0 %vm59_vm0, %v23_v9  ;;  %v603_v13 = vpack.c.bf16 %v46_v12, %v45_v11 }
   0x7   :  { %594 = vmatpush3.bf16.msra.mxu0 %v591_v4 }
   0x8   :  { %596 = vmatprep.subr.bf16.mxu0 %v595_v6 }
   0xb   :  { %598 = vmatpush3.bf16.msra.mxu0 %v595_v6 }
   0xc   :  { %600 = vmatprep.subr.bf16.mxu0 %v599_v10 }
   0xd   :  { %12 = vsyncpa [#allocation4], 0  ;;  %v47_v14 = vld [vmem:[%s870_s1 + $0x40] sm:$0xff]  ;;  %v48_v15 = vld [vmem:[%s870_s1 + $0x48] sm:$0xff]  ;;  %vm108_vm1 = vcmask 1045504   ;;  %v679_v36 = vmov 0.0|0.0  }
   0xe   :  { %v607_v16 = vpack.c.bf16 %v48_v15, %v47_v14  ;;  %v49_v17 = vld [vmem:[%s870_s1 + $0x50] sm:$0xff]  ;;  %v50_v18 = vld [vmem:[%s870_s1 + $0x58] sm:$0xff]  ;;  %v51_v20 = vld [vmem:[%s870_s1 + $0x60] sm:$0x3f]  ;;  %615 = vmatprep.subr.bf16.mxu1 %v679_v36  ;;  %vm680_vm2 = vmmov 0   ;;  %v681_v37 = vmov 0.0  }
   0xf   :  { %602 = vmatpush3.bf16.msra.mxu0 %v599_v10  ;;  %v611_v19 = vpack.c.bf16 %v50_v18, %v49_v17  ;;  %v24_v21 = vld [vmem:[%s869_s0 + $0x8] sm:$0xff]  ;;  %v25_v22 = vld [vmem:[%s869_s0 + $0x10] sm:$0xff]  ;;  %v26_v23 = vld [vmem:[%s869_s0 + $0x18] sm:$0xff]  ;;  %588 = vmatprep.mubr.msk.f32.mxu1 %vm680_vm2, %v681_v37  ;;  %v682_v39 = vmov 0   ;;  %vm284_vm3 = vcmask 408576   ;;  %s683_s27 = smov [#allocation3]  }
  0x10   :  { %604 = vmatprep.subr.bf16.mxu0 %v603_v13  ;;  %v27_v24 = vld [vmem:[%s869_s0 + $0x20] sm:$0xff]  ;;  %v28_v25 = vld [vmem:[%s869_s0 + $0x28] sm:$0xff]  ;;  %v29_v26 = vld [vmem:[%s869_s0 + $0x30] sm:$0xff]  ;;  %652 = vset.pattern.permute.xlu0 %v682_v39  ;;  %s417_s1 = sshll.u32 %s683_s27, 4  ;;  %s418_s1 = int_to_ptr.vmem [resolvable:$true] %s417_s1 }
  0x11   :  { %v30_v27 = vld [vmem:[%s869_s0 + $0x38] sm:$0xff]  ;;  %v31_v28 = vld [vmem:[%s869_s0 + $0x40] sm:$0xff]  ;;  %v32_v29 = vld [vmem:[%s869_s0 + $0x48] sm:$0xff]  ;;  %s659_s4 = scalar_lea.vmem %s418_s1, 32  ;;  %p660_p1 = scmp.lt.s32.totalorder %s418_s1, %s418_s1 }
  0x12   :  { %v33_v30 = vld [vmem:[%s869_s0 + $0x50] sm:$0xff]  ;;  %v34_v31 = vld [vmem:[%s869_s0 + $0x58] sm:$0xff]  ;;  %v35_v32 = vld [vmem:[%s869_s0 + $0x60] sm:$0xff] }
  0x13   :  { %606 = vmatpush3.bf16.msra.mxu0 %v603_v13  ;;  %v36_v33 = vld [vmem:[%s869_s0 + $0x68] sm:$0xff]  ;;  %v37_v34 = vld [vmem:[%s869_s0 + $0x70] sm:$0xff]  ;;  %v38_v35 = vld [vmem:[%s869_s0 + $0x78] sm:$0xff] }
  0x14   :  { %608 = vmatprep.subr.bf16.mxu0 %v607_v16  ;;  %v274_v38 = vld [vmem:[#allocation2] sm:$0x1]  ;;  %vm826_vm4 = vmpackc.low %vm284_vm3, %vm284_vm3 }
  0x15   :  { %277 = vperm.xlu0 %652, %v274_v38   ;;  %v425_v40 = vld [vmem:[%s871_s2] ss:$0 sm:$0xff] }
  0x17   :  { %610 = vmatpush3.bf16.msra.mxu0 %v607_v16 }
  0x18   :  { %612 = vmatprep.subr.bf16.mxu0 %v611_v19 }
  0x1b   :  { %614 = vmatpush3.bf16.msra.mxu0 %v611_v19 }
  0x1c   :  { %530 = vmatprep.subr.msk.mxu0 %vm108_vm1, %v51_v20 }
  0x1f   :  { %531 = vmatpush3.msk.msra.mxu0 %vm108_vm1, %v51_v20 }
  0x20   :  { %533 = vmatmul.mubr.msk.f32.vlgmr.msra.gmra.mrb[0].mxu0 %vm59_vm0, %v24_v21 }
  0x21   :  { %535 = vmatprep.mubr.msk.f32.mxu0 %vm59_vm0, %v25_v22 }
  0x24   :  { %536 = vmatmul.mubr.msk.f32.gmra.mrb[2].mxu0 %vm59_vm0, %v26_v23 }
  0x25   :  { %538 = vmatprep.mubr.msk.f32.mxu0 %vm59_vm0, %v27_v24 }
  0x28   :  { %539 = vmatmul.mubr.msk.f32.gmra.mrb[4].mxu0 %vm59_vm0, %v28_v25 }
  0x29   :  { %541 = vmatprep.mubr.msk.f32.mxu0 %vm59_vm0, %v29_v26 }
  0x2c   :  { %542 = vmatmul.mubr.msk.f32.gmra.mrb[6].mxu0 %vm59_vm0, %v30_v27 }
  0x2d   :  { %544 = vmatprep.mubr.msk.f32.mxu0 %vm59_vm0, %v31_v28 }
  0x30   :  { %545 = vmatmul.mubr.msk.f32.gmra.mrb[8].mxu0 %vm59_vm0, %v32_v29 }
  0x31   :  { %547 = vmatprep.mubr.msk.f32.mxu0 %vm59_vm0, %v33_v30 }
  0x34   :  { %548 = vmatmul.mubr.msk.f32.gmra.mrb[10].mxu0 %vm59_vm0, %v34_v31 }
  0x35   :  { %550 = vmatprep.mubr.msk.f32.mxu0 %vm59_vm0, %v35_v32 }
  0x38   :  { %551 = vmatmul.mubr.msk.f32.gmra.mrb[12].mxu0 %vm59_vm0, %v36_v33 }
  0x39   :  { %553 = vmatprep.mubr.msk.f32.mxu0 %vm59_vm0, %v37_v34  ;;  %v273_v34 = vld [vmem:[%s872_s3] sm:$0x1]  ;;  %s655_s3 = scalar_lea.vmem %s418_s1, 16 }
  0x3a   :  { %p656_p0 = scmp.ne.s32.totalorder %s418_s1, %s655_s3  ;;  %p661_p2 = scmp.lt.s32.totalorder %s659_s4, %s655_s3 }
  0x3c   :  { %554 = vmatmul.mubr.msk.f32.gmra.mrb[14].mxu0 %vm59_vm0, %v38_v35  ;;  %v280_v35 = vlaneseq  ;;  %p662_p3 = por %p661_p2, %p660_p1 }
  0x3e   :  { %v281_v37 = vshrl.u32 %v280_v35, 7  ;;  %p663_p4 = pnand %p662_p3, %p656_p0 }
  0x40   :  { %v282_v38 = vsub.s32 0, %v281_v37 }
  0x94   :  { %v278_v39 = vpop.permute.xlu0 %277 }
  0xf3   :  { %v534_v41 = vpop.f32.mrb[0].mxu0 }
  0xf4   :  { %v184_v42 = vadd.f32 %v534_v41, %v425_v40  ;;  %v178_v43 = vpop.f32.mrb[1].mxu0 }
  0xf5   :  { %v179_v44 = vadd.f32 %v425_v40, %v178_v43 }
  0xf6   :  { %v258_v45 = vmax.f32 %v184_v42, 0.0 }
  0xf7   :  { %v257_v46 = vmax.f32 %v179_v44, 0.0  ;;  %v537_v47 = vpop.f32.mrb[2].mxu0 }
  0xf8   :  { %v194_v48 = vadd.f32 %v537_v47, %v425_v40  ;;  %v188_v49 = vpop.f32.mrb[3].mxu0 }
  0xf9   :  { %v616_v51 = vpack.c.bf16 %v258_v45, %v257_v46  ;;  %v189_v52 = vadd.f32 %v425_v40, %v188_v49 }
  0xfa   :  { %v260_v53 = vmax.f32 %v194_v48, 0.0 }
  0xfb   :  { %v259_v54 = vmax.f32 %v189_v52, 0.0  ;;  %618 = vmatpush3.bf16.xpose.msk.msra.mxu1 %vm826_vm4, %v616_v51  ;;  %v540_v55 = vpop.f32.mrb[4].mxu0 }
  0xfc   :  { %v204_v56 = vadd.f32 %v540_v55, %v425_v40  ;;  %619 = vmatprep.subr.bf16.mxu1 %v679_v36  ;;  %v198_v57 = vpop.f32.mrb[5].mxu0 }
  0xfd   :  { %v620_v58 = vpack.c.bf16 %v260_v53, %v259_v54  ;;  %v199_v59 = vadd.f32 %v425_v40, %v198_v57 }
  0xfe   :  { %v262_v60 = vmax.f32 %v204_v56, 0.0 }
  0xff   :  { %v261_v61 = vmax.f32 %v199_v59, 0.0  ;;  %v543_v62 = vpop.f32.mrb[6].mxu0 }
 0x100   :  { %v214_v63 = vadd.f32 %v543_v62, %v425_v40  ;;  %v208_v0 = vpop.f32.mrb[7].mxu0 }
 0x101   :  { %v624_v1 = vpack.c.bf16 %v262_v60, %v261_v61  ;;  %v209_v2 = vadd.f32 %v425_v40, %v208_v0 }
 0x102   :  { %v264_v3 = vmax.f32 %v214_v63, 0.0 }
 0x103   :  { %622 = vmatpush3.bf16.xpose.msk.msra.mxu1 %vm826_vm4, %v620_v58  ;;  %v263_v4 = vmax.f32 %v209_v2, 0.0  ;;  %v546_v5 = vpop.f32.mrb[8].mxu0 }
 0x104   :  { %623 = vmatprep.subr.bf16.mxu1 %v679_v36  ;;  %v224_v6 = vadd.f32 %v546_v5, %v425_v40  ;;  %v218_v7 = vpop.f32.mrb[9].mxu0 }
 0x105   :  { %v628_v8 = vpack.c.bf16 %v264_v3, %v263_v4  ;;  %v219_v9 = vadd.f32 %v425_v40, %v218_v7 }
 0x106   :  { %v266_v10 = vmax.f32 %v224_v6, 0.0 }
 0x107   :  { %v265_v11 = vmax.f32 %v219_v9, 0.0  ;;  %v549_v12 = vpop.f32.mrb[10].mxu0 }
 0x108   :  { %v234_v13 = vadd.f32 %v549_v12, %v425_v40  ;;  %v228_v14 = vpop.f32.mrb[11].mxu0 }
 0x109   :  { %v632_v15 = vpack.c.bf16 %v266_v10, %v265_v11  ;;  %v229_v16 = vadd.f32 %v425_v40, %v228_v14 }
 0x10a   :  { %v268_v17 = vmax.f32 %v234_v13, 0.0 }
 0x10b   :  { %626 = vmatpush3.bf16.xpose.msk.msra.mxu1 %vm826_vm4, %v624_v1  ;;  %v267_v18 = vmax.f32 %v229_v16, 0.0  ;;  %v552_v19 = vpop.f32.mrb[12].mxu0 }
 0x10c   :  { %627 = vmatprep.subr.bf16.mxu1 %v679_v36  ;;  %v244_v20 = vadd.f32 %v552_v19, %v425_v40  ;;  %v238_v21 = vpop.f32.mrb[13].mxu0 }
 0x10d   :  { %v636_v22 = vpack.c.bf16 %v268_v17, %v267_v18  ;;  %v239_v23 = vadd.f32 %v425_v40, %v238_v21 }
 0x10e   :  { %v270_v24 = vmax.f32 %v244_v20, 0.0 }
 0x10f   :  { %v269_v25 = vmax.f32 %v239_v23, 0.0  ;;  %v555_v26 = vpop.f32.mrb[14].mxu0 }
 0x110   :  { %v254_v27 = vadd.f32 %v555_v26, %v425_v40  ;;  %v248_v28 = vpop.f32.mrb[15].mxu0 }
 0x111   :  { %v640_v29 = vpack.c.bf16 %v270_v24, %v269_v25  ;;  %v249_v30 = vadd.f32 %v425_v40, %v248_v28  ;;  %v283_v40 = vrot.slane %v278_v39, %v282_v38 }
 0x112   :  { %v272_v31 = vmax.f32 %v254_v27, 0.0 }
 0x113   :  { %630 = vmatpush3.bf16.xpose.msk.msra.mxu1 %vm826_vm4, %v628_v8  ;;  %v271_v32 = vmax.f32 %v249_v30, 0.0 }
 0x114   :  { %631 = vmatprep.subr.bf16.mxu1 %v679_v36 }
 0x115   :  { %v644_v33 = vpack.c.bf16 %v272_v31, %v271_v32 }
 0x11b   :  { %634 = vmatpush3.bf16.xpose.msk.msra.mxu1 %vm826_vm4, %v632_v15 }
 0x11c   :  { %635 = vmatprep.subr.bf16.mxu1 %v679_v36 }
 0x123   :  { %638 = vmatpush3.bf16.xpose.msk.msra.mxu1 %vm826_vm4, %v636_v22 }
 0x124   :  { %639 = vmatprep.subr.bf16.mxu1 %v679_v36 }
 0x12b   :  { %642 = vmatpush3.bf16.xpose.msk.msra.mxu1 %vm826_vm4, %v640_v29 }
 0x12c   :  { %643 = vmatprep.subr.bf16.mxu1 %v679_v36 }
 0x133   :  { %646 = vmatpush3.bf16.xpose.msk.msra.mxu1 %vm826_vm4, %v644_v33 }
 0x13a   :  { %589 = vmatmul.mubr.msk.f32.vlgmr.msra.gmra.mrb[0].mxu1 %vm284_vm3, %v273_v34 }
 0x20d   :  { %v402_v41 = vpop.f32.mrb[0].mxu1 }
 0x20e   :  { %v403_v42 = vadd.f32 %v402_v41, %v283_v40  ;;  %v590_v43 = vpop.f32.mrb[1].mxu1 }
 0x210   :  { %v406_v44 = vmul.f32 0.5, %v403_v42 }
 0x212   :  { %653 = vtanh.f32 %v406_v44 }
 0x21c   :  { %v654_v36 = vpop.eup %653 }
 0x21d   :  { %v408_v45 = vmul.f32 0.5, %v654_v36 }
 0x21f   :  { %v409_v46 = vadd.f32 0.5, %v408_v45 }
 0x221   :  { %410 = vst [vmem:[#allocation3] sm:$0x1] %v409_v46 }
 0x222   :  { %666 = shalt.err (!%p663_p4)
}
 0x223   :  { %s667_s30 = scalar_lea.hbm %s874_s5, 16 }
 0x224   :  { %p668_p5 = scmp.ne.s32.totalorder %s874_s5, %s667_s30  ;;  %p671_p6 = scmp.lt.u32.totalorder %s667_s30, %s874_s5 }
 0x226   :  { %p673_p7 = pnand %p671_p6, %p668_p5 }
 0x228   :  { %676 = shalt.err (!%p673_p7)
}
 0x229   :  { %420 = dma.vmem_to_hbm [thread:$0]  %s418_s1, 16, %s874_s5, [#allocation4]  }
 0x22a   :  { %677 = dma.done.wait [#allocation4], 16  }
 0x22b   :  { %678 = vsyncadd [#allocation4], 4294967280 }
 0x22c   :  { %424 = vsyncpa [#allocation4], 1 }

</bundles_post_ra>
